<compile_context>
chip_gen: v5e
topology: v5e:2x2
jax: 0.10.0
libtpu: 0.0.40
codegen_flags: <defaults>
</compile_context>

<pallas_src>
import functools

import jax
import jax.numpy as jnp
from jax.experimental import pallas as pl
from jax.experimental.pallas import tpu as pltpu


def _label_smooth_kernel(x_ref, t_ref, out_ref, *, smoothing, total_n):
    """One grid step: partial label-smoothed-CE sum for this row block."""
    i = pl.program_id(0)

    x = x_ref[...].astype(jnp.float32)            # (TB, C), f32 compute path
    tb, c = x.shape

    off = smoothing / (c - 1.0) if c > 1 else 0.0     # C==1: documented divergence
    on = 1.0 - smoothing
    w_total = off * (c - 1.0) + on                    # == 1.0 for C > 1

    # log-softmax normalizer: max + exp-sum lane reductions -> (TB, 1).
    m = jnp.max(x, axis=-1, keepdims=True)
    lse = jnp.log(jnp.sum(jnp.exp(x - m), axis=-1, keepdims=True))

    # Single fused weighted reduce:
    #   loss_i = (m + lse) * sum_c(w_c) - sum_c(w_c * x_c),
    #   w_c    = off + (on - off) * [c == target_i]
    classes = jax.lax.broadcasted_iota(jnp.int32, (tb, c), 1)
    tgt = t_ref[...]                                                    # (TB, 1)
    w = jnp.where(classes == tgt, on, off)
    wx = jnp.sum(w * x, axis=-1, keepdims=True)                         # (TB, 1)

    per_sample = (m + lse) * w_total - wx                               # (TB, 1)

    # Mask rows past N.  The ragged last block reads uninitialized HBM that may
    # be Inf/NaN; jnp.where *selects* (does not multiply), so garbage rows are
    # replaced by exact zeros and cannot poison the partial sum.
    row_ids = i * tb + jax.lax.broadcasted_iota(jnp.int32, (tb, 1), 0)
    per_sample = jnp.where(row_ids < total_n, per_sample, 0.0)

    # Lane-dense, unmasked store of this block's partial sum; the wrapper reads
    # [:, 0, 0] and finishes sum + mean.  Each block owns its output block, so
    # the grid axis is safely "parallel" (v7x megacore).
    partial = jnp.sum(per_sample)
    out_ref[...] = jnp.full(out_ref.shape, partial, dtype=jnp.float32)


def _hw_budgets():
    """(input-tile byte budget, vmem_limit_bytes) per TPU generation."""
    vmem_cap = 64 * 1024 * 1024                   # conservative default (v7x-sized)
    try:
        info = pltpu.get_tpu_info()
        vmem_cap = int(getattr(info, "vmem_capacity_bytes", vmem_cap))
    except Exception:
        pass
    if vmem_cap >= 100 * 1024 * 1024:             # v5e / v6e: 128 MiB physical VMEM
        return 6 * 1024 * 1024, 96 * 1024 * 1024
    return 2 * 1024 * 1024, 48 * 1024 * 1024      # v7x: 64 MiB physical VMEM


def _pick_block_rows(n, c, itemsize, target_tile_bytes):
    """Largest row-tile that fits the byte budget (no artificial row cap)."""
    sublane = {4: 8, 2: 16, 1: 32}.get(itemsize, 8)
    br = target_tile_bytes // max(1, c * itemsize)
    br = (br // sublane) * sublane
    br = max(br, sublane)
    if br >= n:
        # Single full-extent block: block dims equal to the array dims are
        # always legal, regardless of (8, 128) alignment.
        return n
    return br


def label_smooth_loss(logits, targets, smoothing=0.0, block_rows=None):
    """logits: (N, C) float (f32/bf16, kept in native dtype); targets: (N,) int.

    Returns the scalar f32 label-smoothed cross-entropy loss (mean over N).
    """
    n, c = logits.shape
    itemsize = jnp.dtype(logits.dtype).itemsize
    tile_budget, gen_vmem_limit = _hw_budgets()
    if block_rows is None:
        block_rows = _pick_block_rows(n, c, itemsize, tile_budget)

    # NO padding of logits (it would cost a full extra HBM read+write); the
    # ragged last block is handled by the in-kernel row mask.
    num_blocks = pl.cdiv(n, block_rows)
    targets_2d = targets.astype(jnp.int32).reshape(n, 1)

    kernel = functools.partial(
        _label_smooth_kernel, smoothing=float(smoothing), total_n=n)

    cost = pl.CostEstimate(
        flops=6 * n * c,
        transcendentals=n * c,
        bytes_accessed=n * c * itemsize + n * 4 + num_blocks * 8 * 128 * 4,
    )

    # VMEM audit: double-buffered input tile + lane-padded targets tile
    # (~512 B/row per buffer) + ~4 live (TB, C) f32 intermediates + slack.
    needed = (2 * block_rows * c * itemsize
              + 2 * block_rows * 512
              + 4 * block_rows * c * 4
              + (2 << 20))
    vmem_limit = int(min(gen_vmem_limit, max(32 * 1024 * 1024, needed)))

    partials = pl.pallas_call(
        kernel,
        out_shape=jax.ShapeDtypeStruct((num_blocks, 8, 128), jnp.float32),
        grid_spec=pltpu.PrefetchScalarGridSpec(
            num_scalar_prefetch=0,
            grid=(num_blocks,),
            in_specs=[
                pl.BlockSpec((block_rows, c), lambda i: (i, 0)),
                pl.BlockSpec((block_rows, 1), lambda i: (i, 0)),
            ],
            out_specs=pl.BlockSpec((1, 8, 128), lambda i: (i, 0, 0)),
        ),
        compiler_params=pltpu.CompilerParams(
            # TODO(synk): if an xprof trace shows one idle TC on v7x, switch to
            # pltpu.CORE_PARALLEL or an explicit core_map split.
            dimension_semantics=("parallel",),
            vmem_limit_bytes=vmem_limit,
        ),
        cost_estimate=cost,
    )(logits, targets_2d)

    # Finish the reduction: one f32 partial per block, then the mean over N.
    return jnp.sum(partials[:, 0, 0]) / jnp.float32(n)


def _reference_loss(logits, targets, smoothing):
    n, c = logits.shape
    log_prob = jax.nn.log_softmax(logits.astype(jnp.float32), axis=-1)
    off = smoothing / (c - 1.0) if c > 1 else 0.0
    weight = jnp.full((n, c), off, dtype=jnp.float32)
    weight = weight.at[jnp.arange(n), targets].set(1.0 - smoothing)
    return jnp.mean(jnp.sum(-weight * log_prob, axis=-1))


if __name__ == "__main__":
    key = jax.random.PRNGKey(0)
    k1, k2, k3, k4, k5, k6 = jax.random.split(key, 6)

    # Test 1: f32 logits, smoothing=0.1, single full-extent block.
    N, C = 16, 32
    smoothing = 0.1
    logits = jax.random.normal(k1, (N, C), dtype=jnp.float32)
    targets = jax.random.randint(k2, (N,), 0, C, dtype=jnp.int32)
    loss = jax.block_until_ready(label_smooth_loss(logits, targets, smoothing))
    ref = _reference_loss(logits, targets, smoothing)
    assert jnp.allclose(loss, ref, atol=1e-5, rtol=1e-5), (loss, ref)

    # Test 2: bf16 logits, N not sublane-aligned (full-extent block, no pad).
    N2, C2 = 10, 160
    smoothing2 = 0.2
    logits2 = jax.random.normal(k3, (N2, C2), dtype=jnp.bfloat16)
    targets2 = jax.random.randint(k4, (N2,), 0, C2, dtype=jnp.int32)
    loss2 = jax.block_until_ready(label_smooth_loss(logits2, targets2, smoothing2))
    ref2 = _reference_loss(logits2, targets2, smoothing2)
    assert jnp.allclose(loss2, ref2, atol=1e-4, rtol=1e-4), (loss2, ref2)

    # Test 3: explicit small block_rows so N % block_rows != 0 -> ragged last
    # block with in-kernel masking (the path that replaced wrapper-side pad).
    N3, C3 = 20, 128
    smoothing3 = 0.15
    logits3 = jax.random.normal(k5, (N3, C3), dtype=jnp.float32)
    targets3 = jax.random.randint(k6, (N3,), 0, C3, dtype=jnp.int32)
    loss3 = jax.block_until_ready(
        label_smooth_loss(logits3, targets3, smoothing3, block_rows=8))
    ref3 = _reference_loss(logits3, targets3, smoothing3)
    assert jnp.allclose(loss3, ref3, atol=1e-5, rtol=1e-5), (loss3, ref3)

    print("KERNEL_OK")
</pallas_src>

<mosaic_0001>
module attributes {stable_mosaic.version = 11 : i64} {
  func.func @_label_smooth_kernel(%arg0: i32, %arg1: memref<16x32xf32, #tpu.memory_space<vmem>>, %arg2: memref<16x1xi32, #tpu.memory_space<vmem>>, %arg3: memref<1x8x128xf32, #tpu.memory_space<vmem>>) attributes {dimension_semantics = [#tpu.dimension_semantics<parallel>], iteration_bounds = array<i64: 1>, scalar_prefetch = 0 : i64, scratch_operands = 0 : i64, tpu.core_type = #tpu.core_type<tc>, window_params = [{transform_indices = @transform_0, window_bounds = array<i64: 16, 32>}, {transform_indices = @transform_1, window_bounds = array<i64: 16, 1>}, {transform_indices = @transform_2, window_bounds = array<i64: 1, 8, 128>}]} {
    %c0 = arith.constant 0 : index
    %c0_0 = arith.constant 0 : index
    %0 = vector.load %arg1[%c0, %c0_0] : memref<16x32xf32, #tpu.memory_space<vmem>>, vector<16x32xf32>
    %cst = arith.constant dense<0xFF800000> : vector<16xf32>
    %1 = vector.multi_reduction <maximumf>, %0, %cst [1] : vector<16x32xf32> to vector<16xf32>
    %2 = vector.shape_cast %1 : vector<16xf32> to vector<16x1xf32>
    %3 = vector.broadcast %2 : vector<16x1xf32> to vector<16x32xf32>
    %4 = arith.subf %0, %3 : vector<16x32xf32>
    %5 = math.exp %4 : vector<16x32xf32>
    %cst_1 = arith.constant dense<0.000000e+00> : vector<16xf32>
    %6 = vector.multi_reduction <add>, %5, %cst_1 [1] : vector<16x32xf32> to vector<16xf32>
    %7 = vector.shape_cast %6 : vector<16xf32> to vector<16x1xf32>
    %8 = math.log %7 : vector<16x1xf32>
    %9 = tpu.iota {dimensions = array<i32: 1>} : vector<16x32xi32>
    %c0_2 = arith.constant 0 : index
    %c0_3 = arith.constant 0 : index
    %10 = vector.load %arg2[%c0_2, %c0_3] : memref<16x1xi32, #tpu.memory_space<vmem>>, vector<16x1xi32>
    %11 = vector.broadcast %10 : vector<16x1xi32> to vector<16x32xi32>
    %12 = arith.cmpi eq, %9, %11 : vector<16x32xi32>
    %cst_4 = arith.constant 0.899999976 : f32
    %cst_5 = arith.constant 0.0032258064 : f32
    %13 = vector.broadcast %cst_4 : f32 to vector<16x32xf32>
    %14 = vector.broadcast %cst_5 : f32 to vector<16x32xf32>
    %15 = arith.select %12, %13, %14 : vector<16x32xi1>, vector<16x32xf32>
    %16 = arith.mulf %15, %0 : vector<16x32xf32>
    %cst_6 = arith.constant dense<0.000000e+00> : vector<16xf32>
    %17 = vector.multi_reduction <add>, %16, %cst_6 [1] : vector<16x32xf32> to vector<16xf32>
    %18 = vector.shape_cast %17 : vector<16xf32> to vector<16x1xf32>
    %19 = arith.addf %2, %8 : vector<16x1xf32>
    %cst_7 = arith.constant 1.000000e+00 : f32
    %20 = vector.broadcast %cst_7 : f32 to vector<16x1xf32>
    %21 = arith.mulf %19, %20 : vector<16x1xf32>
    %22 = arith.subf %21, %18 : vector<16x1xf32>
    %c16_i32 = arith.constant 16 : i32
    %23 = arith.muli %arg0, %c16_i32 : i32
    %24 = tpu.iota {dimensions = array<i32: 0>} : vector<16x1xi32>
    %25 = vector.broadcast %23 : i32 to vector<16x1xi32>
    %26 = arith.addi %25, %24 : vector<16x1xi32>
    %c16_i32_8 = arith.constant 16 : i32
    %27 = vector.broadcast %c16_i32_8 : i32 to vector<16x1xi32>
    %28 = arith.cmpi slt, %26, %27 : vector<16x1xi32>
    %cst_9 = arith.constant 0.000000e+00 : f32
    %29 = vector.broadcast %cst_9 : f32 to vector<16x1xf32>
    %30 = arith.select %28, %22, %29 : vector<16x1xi1>, vector<16x1xf32>
    %31 = vector.shape_cast %30 : vector<16x1xf32> to vector<1x16x1xf32>
    %cst_10 = arith.constant dense<0.000000e+00> : vector<1xf32>
    %32 = vector.multi_reduction <add>, %31, %cst_10 [1, 2] : vector<1x16x1xf32> to vector<1xf32>
    %33 = vector.shape_cast %32 : vector<1xf32> to vector<1x1x1xf32>
    %34 = vector.extract %33[0, 0, 0] : f32 from vector<1x1x1xf32>
    %35 = vector.broadcast %34 : f32 to vector<1x8x128xf32>
    %c0_11 = arith.constant 0 : index
    %c0_12 = arith.constant 0 : index
    %c0_13 = arith.constant 0 : index
    %36 = vector.load %arg3[%c0_11, %c0_12, %c0_13] : memref<1x8x128xf32, #tpu.memory_space<vmem>>, vector<1x8x128xf32>
    tpu.vector_store %arg3[%c0_11, %c0_12, %c0_13], %35 {strides = array<i32>} : memref<1x8x128xf32, #tpu.memory_space<vmem>>, vector<1x8x128xf32>,
    return
  }
  func.func @transform_0(%arg0: i32) -> (i32, i32) {
    %c0_i32 = arith.constant 0 : i32
    %c0_i32_0 = arith.constant 0 : i32
    return %arg0, %c0_i32 : i32, i32
  }
  func.func @transform_1(%arg0: i32) -> (i32, i32) {
    %c0_i32 = arith.constant 0 : i32
    %c0_i32_0 = arith.constant 0 : i32
    return %arg0, %c0_i32 : i32, i32
  }
  func.func @transform_2(%arg0: i32) -> (i32, i32, i32) {
    %c0_i32 = arith.constant 0 : i32
    %c0_i32_0 = arith.constant 0 : i32
    %c0_i32_1 = arith.constant 0 : i32
    return %arg0, %c0_i32, %c0_i32_0 : i32, i32, i32
  }
}

</mosaic_0001>

<bundles_post_ra>
// kernel: tpu_custom_call.1
= control target key start
LH: loop header
LB: loop body
LE: loop exit
PB: predicated region body
PF: predicated region fallthrough
CT: control target
= control target key end

     0   :  { %vm14_vm0 = vcmask 261120   ;;  %v146_v3 = vmov 0   ;;  %s185_s0 = inlined_call_operand.vmem [shape: f32[16,32], index: 0, kind: input, shape index: {}]   ;;  %s186_s1 = inlined_call_operand.vmem [shape: s32[16,1], index: 1, kind: input, shape index: {}]   ;;  %s187_s2 = inlined_call_operand.hbm [shape: f32[1,8,128], index: 2, kind: output, shape index: {}]  }
   0x1   :  { %v12_v0 = vld [vmem:[%s185_s0] sm:$0xff]  ;;  %110 = vset.pattern.permute.xlu1 %v146_v3  ;;  %111 = vset.pattern.permute.xlu0 %v146_v3 }
   0x2   :  { %v39_v1 = vld [vmem:[%s186_s1] sm:$0xff]  ;;  %v15_v2 = vsel %vm14_vm0, %v12_v0, -inf }
   0x3   :  { %7 = vsyncpa [#allocation3], 0  ;;  %16 = vmax.xlane.f32.xlu0 %v15_v2  ;;  %42 = vperm.xlu1 %110, %v39_v1   ;;  %v13_v4 = vld [vmem:[%s185_s0 + $0x8] sm:$0xff]  ;;  %v37_v7 = vlaneseq  ;;  %v147_v12 = vmov 0.0032258064   ;;  %vm74_vm3 = vcmask 7168  }
   0x4   :  { %v18_v5 = vsel %vm14_vm0, %v13_v4, -inf  ;;  %v40_v6 = vld [vmem:[%s186_s1 + $0x8] sm:$0xff]  ;;  %s148_s0 = smov [#allocation2]   ;;  %s96_s19 = sshll.u32 %s187_s2, 4  ;;  %s97_s19 = int_to_ptr.hbm [resolvable:$true] %s96_s19 }
   0x5   :  { %v38_v8 = vand.u32 127, %v37_v7  ;;  %s94_s1 = sshll.u32 %s148_s0, 4  ;;  %s95_s1 = int_to_ptr.vmem [resolvable:$true] %s94_s1 }
   0xb   :  { %19 = vmax.xlane.f32.xlu0 %v18_v5  ;;  %45 = vperm.xlu1 %110, %v40_v6  }
  0x75   :  { %v43_v9 = vpop.permute.xlu1 %42 }
  0x76   :  { %v17_v10 = vpop.xlane.xlu0 %16  ;;  %vm47_vm1 = vcmp.eq.s32.totalorder %v38_v8, %v43_v9 }
  0x77   :  { %v21_v11 = vsub.f32 %v12_v0, %v17_v10  ;;  %v49_v13 = vsel %vm47_vm1, 0.9, %v147_v12 }
  0x78   :  { %v51_v14 = vmul.f32 %v49_v13, %v12_v0 }
  0x79   :  { %v23_v15 = vmul.f32 1.442695, %v21_v11 }
  0x7a   :  { %v53_v16 = vsel %vm14_vm0, %v51_v14, 0.0 }
  0x7b   :  { %112 = vpow2.f32 %v23_v15  ;;  %54 = vadd.xlane.f32.xlu0 %v53_v16 }
  0x7d   :  { %v46_v17 = vpop.permute.xlu1 %45 }
  0x7e   :  { %v20_v18 = vpop.xlane.xlu0 %19  ;;  %vm48_vm2 = vcmp.eq.s32.totalorder %v38_v8, %v46_v17 }
  0x7f   :  { %v22_v19 = vsub.f32 %v13_v4, %v20_v18  ;;  %v50_v20 = vsel %vm48_vm2, 0.9, %v147_v12 }
  0x80   :  { %v52_v21 = vmul.f32 %v50_v20, %v13_v4 }
  0x81   :  { %v113_v22 = vpop.eup %112  ;;  %v25_v23 = vmul.f32 1.442695, %v22_v19 }
  0x82   :  { %v27_v24 = vsel %vm14_vm0, %v113_v22, 0.0  ;;  %v56_v25 = vsel %vm14_vm0, %v52_v21, 0.0 }
  0x83   :  { %114 = vpow2.f32 %v25_v23  ;;  %28 = vadd.xlane.f32.xlu2 %v27_v24  ;;  %57 = vadd.xlane.f32.xlu1 %v56_v25 }
  0x89   :  { %v115_v26 = vpop.eup %114 }
  0x8a   :  { %v30_v27 = vsel %vm14_vm0, %v115_v26, 0.0 }
  0x8b   :  { %31 = vadd.xlane.f32.xlu2 %v30_v27 }
  0xee   :  { %v55_v34 = vpop.xlane.xlu0 %54 }
  0xf6   :  { %v29_v28 = vpop.xlane.xlu2 %28  ;;  %v58_v38 = vpop.xlane.xlu1 %57 }
  0xf7   :  { %116 = vlog2.f32 %v29_v28 }
  0xfd   :  { %v117_v29 = vpop.eup %116 }
  0xfe   :  { %v32_v30 = vpop.xlane.xlu2 %31  ;;  %v34_v31 = vmul.f32 0.6931472, %v117_v29 }
  0xff   :  { %118 = vlog2.f32 %v32_v30 }
 0x100   :  { %v59_v32 = vadd.f32 %v34_v31, %v17_v10 }
 0x102   :  { %v61_v37 = vsub.f32 %v59_v32, %v55_v34 }
 0x104   :  { %v75_v40 = vsel %vm74_vm3, %v61_v37, 0.0 }
 0x105   :  { %v119_v33 = vpop.eup %118 }
 0x106   :  { %v36_v35 = vmul.f32 0.6931472, %v119_v33 }
 0x108   :  { %v60_v36 = vadd.f32 %v36_v35, %v20_v18 }
 0x10a   :  { %v62_v39 = vsub.f32 %v60_v36, %v58_v38 }
 0x10c   :  { %v76_v41 = vsel %vm74_vm3, %v62_v39, 0.0 }
 0x10d   :  { %v77_v42 = vadd.f32 %v76_v41, %v75_v40 }
 0x10f   :  { %78 = vadd.xlane.f32.xlu2 %v77_v42 }
 0x182   :  { %v79_v43 = vpop.xlane.xlu2 %78 }
 0x183   :  { %v80_v44 = vrot.slane %v79_v43, 4 }
 0x185   :  { %v81_v45 = vadd.f32 %v80_v44, %v79_v43 }
 0x187   :  { %v82_v46 = vrot.slane %v81_v45, 2 }
 0x189   :  { %v83_v47 = vadd.f32 %v82_v46, %v81_v45 }
 0x18b   :  { %v84_v48 = vrot.slane %v83_v47, 1 }
 0x18d   :  { %v85_v49 = vadd.f32 %v84_v48, %v83_v47 }
 0x18f   :  { %105 = vpush %v85_v49 }
 0x1c0   :  { %s106_s20 = spop %105 }
 0x1c1   :  { %v87_v50 = vstv %s106_s20 }
 0x1c2   :  { %88 = vst [vmem:[#allocation2] sm:$0xff] %v87_v50 }
 0x1c3   :  { %99 = dma.vmem_to_hbm [thread:$0]  %s95_s1, 128, %s97_s19, [#allocation3]  }
 0x1c4   :  { %144 = dma.done.wait [#allocation3], 128  }
 0x1c5   :  { %145 = vsyncadd [#allocation3], 4294967168 }
 0x1c6   :  { %104 = vsyncpa [#allocation3], 1 }

</bundles_post_ra>
